<compile_context>
chip_gen: v7x
topology: tpu7x:2x2x1
jax: 0.10.0
libtpu: 0.0.40
codegen_flags: <defaults>
</compile_context>

<pallas_src>
import functools

import jax
import jax.numpy as jnp
import numpy as np
from jax.experimental import pallas as pl
from jax.experimental.pallas import tpu as pltpu


def _round_up(x, m):
    return ((x + m - 1) // m) * m


def _dice_kernel(pred_ref, tgt_ref, out_i_ref, out_p_ref, out_t_ref,
                 acc_i, acc_p, acc_t, *, num_classes, exponent, ignore_index):
    j = pl.program_id(1)

    @pl.when(j == 0)
    def _():
        acc_i[...] = jnp.zeros_like(acc_i)
        acc_p[...] = jnp.zeros_like(acc_p)
        acc_t[...] = jnp.zeros_like(acc_t)

    # pred may arrive as bf16 (HBM-bound kernel: keep it narrow in HBM,
    # upcast only in-register).
    p = pred_ref[...].astype(jnp.float32)            # (C, TP)  classes x pixels
    t = tgt_ref[...]                                 # (1, TP)  int32

    valid = t != ignore_index                        # (1, TP) bool
    validf = valid.astype(jnp.float32)

    # softmax over the class (sublane) axis
    m = jnp.max(p, axis=0, keepdims=True)            # (1, TP)
    e = jnp.exp(p - m)                               # (C, TP)
    s = jnp.sum(e, axis=0, keepdims=True)            # (1, TP)
    r = pl.reciprocal(s, approx=True)                # EUP slot
    r = r * (2.0 - s * r)                            # one Newton step -> ~f32 exact
    soft = e * r                                     # (C, TP)

    # masked one-hot of clamp(target, 0, C-1); note onehot**exponent == onehot
    tc = jnp.clip(t, 0, num_classes - 1)             # (1, TP)
    classes = jax.lax.broadcasted_iota(jnp.int32, p.shape, 0)   # (C, TP)
    hit = (classes == tc) & valid                    # (C, TP)

    inter = jnp.where(hit, soft, 0.0)                # soft * onehot * valid
    if exponent == 2:
        ppow = soft * soft
    else:
        ppow = soft ** exponent
    ppow = ppow * validf
    tpow = jnp.where(hit, 1.0, 0.0)                  # onehot * valid

    # elementwise (VPU) accumulation into lane-partials; no per-tile XLU reduce
    acc_i[...] += inter
    acc_p[...] += ppow
    acc_t[...] += tpow

    @pl.when(j == pl.num_programs(1) - 1)
    def _():
        out_i_ref[...] = jnp.sum(acc_i[...], axis=-1, keepdims=True)   # (C, 1)
        out_p_ref[...] = jnp.sum(acc_p[...], axis=-1, keepdims=True)
        out_t_ref[...] = jnp.sum(acc_t[...], axis=-1, keepdims=True)


def dice_loss_pallas(pred, target, *, smooth=1.0, exponent=2, loss_weight=1.0,
                     ignore_index=-1, tile_p=8192):
    """pred: (N, C, H, W) float (f32 or bf16), target: (N, H, W) int.
    Returns the scalar dice loss matching PyTorch DiceLoss.forward."""
    N, C, H, W = pred.shape
    P = H * W

    pred3 = pred.reshape(N, C, P)                    # free reshape (NCHW order kept)
    tgt3 = target.reshape(N, 1, P).astype(jnp.int32)

    # pixel tile: multiple of 128 lanes, no larger than the (padded) pixel count
    tile_p = _round_up(min(tile_p, _round_up(P, 128)), 128)
    Pp = _round_up(P, tile_p)
    if Pp != P:
        pred3 = jnp.pad(pred3, ((0, 0), (0, 0), (0, Pp - P)))
        tgt3 = jnp.pad(tgt3, ((0, 0), (0, 0), (0, Pp - P)),
                       constant_values=ignore_index)  # padded pixels are ignored

    grid = (N, Pp // tile_p)
    kernel = functools.partial(
        _dice_kernel, num_classes=C, exponent=exponent,
        ignore_index=int(ignore_index))

    out_i, out_p, out_t = pl.pallas_call(
        kernel,
        out_shape=(jax.ShapeDtypeStruct((N, C, 1), jnp.float32),) * 3,
        grid_spec=pltpu.PrefetchScalarGridSpec(
            num_scalar_prefetch=0,
            grid=grid,
            in_specs=[
                pl.BlockSpec((None, C, tile_p), lambda n, j: (n, 0, j)),
                pl.BlockSpec((None, 1, tile_p), lambda n, j: (n, 0, j)),
            ],
            out_specs=(
                pl.BlockSpec((None, C, 1), lambda n, j: (n, 0, 0)),
                pl.BlockSpec((None, C, 1), lambda n, j: (n, 0, 0)),
                pl.BlockSpec((None, C, 1), lambda n, j: (n, 0, 0)),
            ),
            scratch_shapes=[pltpu.VMEM((C, tile_p), jnp.float32)] * 3,
        ),
        compiler_params=pltpu.CompilerParams(
            dimension_semantics=("parallel", "arbitrary")),
    )(pred3, tgt3)

    # tiny final combine in plain JAX (3*C numbers per batch element)
    inter = jnp.sum(out_i[:, :, 0], axis=0)          # (C,)
    ppow = jnp.sum(out_p[:, :, 0], axis=0)
    tpow = jnp.sum(out_t[:, :, 0], axis=0)

    num = 2.0 * inter + smooth
    den = ppow + tpow + smooth
    dice = 1.0 - num / den                           # (C,)
    # PyTorch loop skips class i == ignore_index (but still divides by C)
    class_mask = (jnp.arange(C) != ignore_index).astype(dice.dtype)
    return loss_weight * jnp.sum(dice * class_mask) / C


def dice_loss_ref(pred, target, *, smooth=1.0, exponent=2, loss_weight=1.0,
                  ignore_index=-1):
    """Pure-JAX reference mirroring the PyTorch forward."""
    N, C, H, W = pred.shape
    p = jnp.transpose(pred, (1, 0, 2, 3)).reshape(C, -1).T
    t = target.reshape(-1)
    valid = (t != ignore_index)
    p = jax.nn.softmax(p, axis=1)
    oh = jax.nn.one_hot(jnp.clip(t, 0, C - 1), C)
    v = valid.astype(p.dtype)
    total = 0.0
    for i in range(C):
        if i != ignore_index:
            num = jnp.sum(p[:, i] * oh[:, i] * v) * 2 + smooth
            den = jnp.sum((p[:, i] ** exponent + oh[:, i] ** exponent) * v) + smooth
            total += 1 - num / den
    return loss_weight * total / C


if __name__ == "__main__":
    key = jax.random.PRNGKey(0)
    k1, k2 = jax.random.split(key)
    N, C, H, W = 2, 4, 16, 16
    pred = jax.random.normal(k1, (N, C, H, W), dtype=jnp.float32)
    target = jax.random.randint(k2, (N, H, W), minval=-1, maxval=C,
                                dtype=jnp.int32)  # includes some ignore_index

    loss = dice_loss_pallas(pred, target, smooth=1.0, exponent=2,
                            loss_weight=1.0, ignore_index=-1)
    loss = jax.block_until_ready(loss)

    ref = jax.block_until_ready(
        dice_loss_ref(pred, target, smooth=1.0, exponent=2,
                      loss_weight=1.0, ignore_index=-1))
    np.testing.assert_allclose(np.asarray(loss), np.asarray(ref),
                               rtol=5e-4, atol=1e-5)
    print("KERNEL_OK")
</pallas_src>

<mosaic_0001>
module attributes {stable_mosaic.version = 11 : i64} {
  func.func @_dice_kernel(%arg0: i32, %arg1: i32, %arg2: memref<1x4x256xf32, #tpu.memory_space<vmem>>, %arg3: memref<1x1x256xi32, #tpu.memory_space<vmem>>, %arg4: memref<1x4x1xf32, #tpu.memory_space<vmem>>, %arg5: memref<1x4x1xf32, #tpu.memory_space<vmem>>, %arg6: memref<1x4x1xf32, #tpu.memory_space<vmem>>, %arg7: memref<4x256xf32, #tpu.memory_space<vmem>>, %arg8: memref<4x256xf32, #tpu.memory_space<vmem>>, %arg9: memref<4x256xf32, #tpu.memory_space<vmem>>) attributes {dimension_semantics = [#tpu.dimension_semantics<parallel>, #tpu.dimension_semantics<arbitrary>], iteration_bounds = array<i64: 2, 1>, scalar_prefetch = 0 : i64, scratch_operands = 3 : i64, tpu.core_type = #tpu.core_type<tc>, window_params = [{transform_indices = @transform_0, window_bounds = array<i64: 1, 4, 256>}, {transform_indices = @transform_1, window_bounds = array<i64: 1, 1, 256>}, {transform_indices = @transform_2, window_bounds = array<i64: 1, 4, 1>}, {transform_indices = @transform_3, window_bounds = array<i64: 1, 4, 1>}, {transform_indices = @transform_4, window_bounds = array<i64: 1, 4, 1>}]} {
    %c0_i32 = arith.constant 0 : i32
    %0 = arith.cmpi eq, %arg1, %c0_i32 : i32
    %1 = arith.extui %0 : i1 to i32
    %c0_i32_0 = arith.constant 0 : i32
    %2 = arith.cmpi ne, %1, %c0_i32_0 : i32
    scf.if %2 {
      %cst_26 = arith.constant 0.000000e+00 : f32
      %54 = vector.broadcast %cst_26 : f32 to vector<4x256xf32>
      %c0_27 = arith.constant 0 : index
      %c0_28 = arith.constant 0 : index
      %55 = vector.load %arg7[%c0_27, %c0_28] : memref<4x256xf32, #tpu.memory_space<vmem>>, vector<4x256xf32>
      tpu.vector_store %arg7[%c0_27, %c0_28], %54 {strides = array<i32>} : memref<4x256xf32, #tpu.memory_space<vmem>>, vector<4x256xf32>,
      %cst_29 = arith.constant 0.000000e+00 : f32
      %56 = vector.broadcast %cst_29 : f32 to vector<4x256xf32>
      %c0_30 = arith.constant 0 : index
      %c0_31 = arith.constant 0 : index
      %57 = vector.load %arg8[%c0_30, %c0_31] : memref<4x256xf32, #tpu.memory_space<vmem>>, vector<4x256xf32>
      tpu.vector_store %arg8[%c0_30, %c0_31], %56 {strides = array<i32>} : memref<4x256xf32, #tpu.memory_space<vmem>>, vector<4x256xf32>,
      %cst_32 = arith.constant 0.000000e+00 : f32
      %58 = vector.broadcast %cst_32 : f32 to vector<4x256xf32>
      %c0_33 = arith.constant 0 : index
      %c0_34 = arith.constant 0 : index
      %59 = vector.load %arg9[%c0_33, %c0_34] : memref<4x256xf32, #tpu.memory_space<vmem>>, vector<4x256xf32>
      tpu.vector_store %arg9[%c0_33, %c0_34], %58 {strides = array<i32>} : memref<4x256xf32, #tpu.memory_space<vmem>>, vector<4x256xf32>,
    } else {
    }
    %c0 = arith.constant 0 : index
    %c0_1 = arith.constant 0 : index
    %c0_2 = arith.constant 0 : index
    %3 = vector.load %arg2[%c0, %c0_1, %c0_2] : memref<1x4x256xf32, #tpu.memory_space<vmem>>, vector<1x4x256xf32>
    %4 = vector.shape_cast %3 : vector<1x4x256xf32> to vector<4x256xf32>
    %c0_3 = arith.constant 0 : index
    %c0_4 = arith.constant 0 : index
    %c0_5 = arith.constant 0 : index
    %5 = vector.load %arg3[%c0_3, %c0_4, %c0_5] : memref<1x1x256xi32, #tpu.memory_space<vmem>>, vector<1x1x256xi32>
    %6 = vector.shape_cast %5 : vector<1x1x256xi32> to vector<1x256xi32>
    %c-1_i32 = arith.constant -1 : i32
    %7 = vector.broadcast %c-1_i32 : i32 to vector<1x256xi32>
    %8 = arith.cmpi ne, %6, %7 : vector<1x256xi32>
    %9 = arith.extui %8 : vector<1x256xi1> to vector<1x256xi32>
    %10 = arith.sitofp %9 : vector<1x256xi32> to vector<1x256xf32>
    %cst = arith.constant dense<0xFF800000> : vector<256xf32>
    %11 = vector.multi_reduction <maximumf>, %4, %cst [0] : vector<4x256xf32> to vector<256xf32>
    %12 = vector.shape_cast %11 : vector<256xf32> to vector<1x256xf32>
    %13 = vector.broadcast %12 : vector<1x256xf32> to vector<4x256xf32>
    %14 = arith.subf %4, %13 : vector<4x256xf32>
    %15 = math.exp %14 : vector<4x256xf32>
    %cst_6 = arith.constant dense<0.000000e+00> : vector<256xf32>
    %16 = vector.multi_reduction <add>, %15, %cst_6 [0] : vector<4x256xf32> to vector<256xf32>
    %17 = vector.shape_cast %16 : vector<256xf32> to vector<1x256xf32>
    %18 = tpu.reciprocal %17 {approx = true} : vector<1x256xf32> -> vector<1x256xf32>
    %19 = arith.mulf %17, %18 : vector<1x256xf32>
    %cst_7 = arith.constant 2.000000e+00 : f32
    %20 = vector.broadcast %cst_7 : f32 to vector<1x256xf32>
    %21 = arith.subf %20, %19 : vector<1x256xf32>
    %22 = arith.mulf %18, %21 : vector<1x256xf32>
    %23 = vector.broadcast %22 : vector<1x256xf32> to vector<4x256xf32>
    %24 = arith.mulf %15, %23 : vector<4x256xf32>
    %c0_i32_8 = arith.constant 0 : i32
    %c3_i32 = arith.constant 3 : i32
    %25 = vector.broadcast %c0_i32_8 : i32 to vector<1x256xi32>
    %26 = arith.maxsi %25, %6 : vector<1x256xi32>
    %27 = vector.broadcast %c3_i32 : i32 to vector<1x256xi32>
    %28 = arith.minsi %27, %26 : vector<1x256xi32>
    %29 = tpu.iota {dimensions = array<i32: 0>} : vector<4x256xi32>
    %30 = vector.broadcast %28 : vector<1x256xi32> to vector<4x256xi32>
    %31 = arith.cmpi eq, %29, %30 : vector<4x256xi32>
    %32 = vector.broadcast %8 : vector<1x256xi1> to vector<4x256xi1>
    %33 = arith.andi %31, %32 : vector<4x256xi1>
    %cst_9 = arith.constant 0.000000e+00 : f32
    %34 = vector.broadcast %cst_9 : f32 to vector<4x256xf32>
    %35 = arith.select %33, %24, %34 : vector<4x256xi1>, vector<4x256xf32>
    %36 = arith.mulf %24, %24 : vector<4x256xf32>
    %37 = vector.broadcast %10 : vector<1x256xf32> to vector<4x256xf32>
    %38 = arith.mulf %36, %37 : vector<4x256xf32>
    %cst_10 = arith.constant 1.000000e+00 : f32
    %cst_11 = arith.constant 0.000000e+00 : f32
    %39 = vector.broadcast %cst_10 : f32 to vector<4x256xf32>
    %40 = vector.broadcast %cst_11 : f32 to vector<4x256xf32>
    %41 = arith.select %33, %39, %40 : vector<4x256xi1>, vector<4x256xf32>
    %c0_12 = arith.constant 0 : index
    %c0_13 = arith.constant 0 : index
    %42 = vector.load %arg7[%c0_12, %c0_13] : memref<4x256xf32, #tpu.memory_space<vmem>>, vector<4x256xf32>
    %43 = arith.addf %42, %35 : vector<4x256xf32>
    %c0_14 = arith.constant 0 : index
    %c0_15 = arith.constant 0 : index
    %44 = vector.load %arg7[%c0_14, %c0_15] : memref<4x256xf32, #tpu.memory_space<vmem>>, vector<4x256xf32>
    tpu.vector_store %arg7[%c0_14, %c0_15], %43 {strides = array<i32>} : memref<4x256xf32, #tpu.memory_space<vmem>>, vector<4x256xf32>,
    %c0_16 = arith.constant 0 : index
    %c0_17 = arith.constant 0 : index
    %45 = vector.load %arg8[%c0_16, %c0_17] : memref<4x256xf32, #tpu.memory_space<vmem>>, vector<4x256xf32>
    %46 = arith.addf %45, %38 : vector<4x256xf32>
    %c0_18 = arith.constant 0 : index
    %c0_19 = arith.constant 0 : index
    %47 = vector.load %arg8[%c0_18, %c0_19] : memref<4x256xf32, #tpu.memory_space<vmem>>, vector<4x256xf32>
    tpu.vector_store %arg8[%c0_18, %c0_19], %46 {strides = array<i32>} : memref<4x256xf32, #tpu.memory_space<vmem>>, vector<4x256xf32>,
    %c0_20 = arith.constant 0 : index
    %c0_21 = arith.constant 0 : index
    %48 = vector.load %arg9[%c0_20, %c0_21] : memref<4x256xf32, #tpu.memory_space<vmem>>, vector<4x256xf32>
    %49 = arith.addf %48, %41 : vector<4x256xf32>
    %c0_22 = arith.constant 0 : index
    %c0_23 = arith.constant 0 : index
    %50 = vector.load %arg9[%c0_22, %c0_23] : memref<4x256xf32, #tpu.memory_space<vmem>>, vector<4x256xf32>
    tpu.vector_store %arg9[%c0_22, %c0_23], %49 {strides = array<i32>} : memref<4x256xf32, #tpu.memory_space<vmem>>, vector<4x256xf32>,
    %c0_i32_24 = arith.constant 0 : i32
    %51 = arith.cmpi eq, %arg1, %c0_i32_24 : i32
    %52 = arith.extui %51 : i1 to i32
    %c0_i32_25 = arith.constant 0 : i32
    %53 = arith.cmpi ne, %52, %c0_i32_25 : i32
    scf.if %53 {
      %c0_26 = arith.constant 0 : index
      %c0_27 = arith.constant 0 : index
      %54 = vector.load %arg7[%c0_26, %c0_27] : memref<4x256xf32, #tpu.memory_space<vmem>>, vector<4x256xf32>
      %cst_28 = arith.constant dense<0.000000e+00> : vector<4xf32>
      %55 = vector.multi_reduction <add>, %54, %cst_28 [1] : vector<4x256xf32> to vector<4xf32>
      %56 = vector.shape_cast %55 : vector<4xf32> to vector<4x1xf32>
      %c0_29 = arith.constant 0 : index
      %c0_30 = arith.constant 0 : index
      %c0_31 = arith.constant 0 : index
      %57 = vector.load %arg4[%c0_29, %c0_30, %c0_31] : memref<1x4x1xf32, #tpu.memory_space<vmem>>, vector<1x4x1xf32>
      %58 = vector.shape_cast %57 : vector<1x4x1xf32> to vector<4x1xf32>
      %59 = vector.shape_cast %56 : vector<4x1xf32> to vector<1x4x1xf32>
      tpu.vector_store %arg4[%c0_29, %c0_30, %c0_31], %59 {strides = array<i32>} : memref<1x4x1xf32, #tpu.memory_space<vmem>>, vector<1x4x1xf32>,
      %c0_32 = arith.constant 0 : index
      %c0_33 = arith.constant 0 : index
      %60 = vector.load %arg8[%c0_32, %c0_33] : memref<4x256xf32, #tpu.memory_space<vmem>>, vector<4x256xf32>
      %cst_34 = arith.constant dense<0.000000e+00> : vector<4xf32>
      %61 = vector.multi_reduction <add>, %60, %cst_34 [1] : vector<4x256xf32> to vector<4xf32>
      %62 = vector.shape_cast %61 : vector<4xf32> to vector<4x1xf32>
      %c0_35 = arith.constant 0 : index
      %c0_36 = arith.constant 0 : index
      %c0_37 = arith.constant 0 : index
      %63 = vector.load %arg5[%c0_35, %c0_36, %c0_37] : memref<1x4x1xf32, #tpu.memory_space<vmem>>, vector<1x4x1xf32>
      %64 = vector.shape_cast %63 : vector<1x4x1xf32> to vector<4x1xf32>
      %65 = vector.shape_cast %62 : vector<4x1xf32> to vector<1x4x1xf32>
      tpu.vector_store %arg5[%c0_35, %c0_36, %c0_37], %65 {strides = array<i32>} : memref<1x4x1xf32, #tpu.memory_space<vmem>>, vector<1x4x1xf32>,
      %c0_38 = arith.constant 0 : index
      %c0_39 = arith.constant 0 : index
      %66 = vector.load %arg9[%c0_38, %c0_39] : memref<4x256xf32, #tpu.memory_space<vmem>>, vector<4x256xf32>
      %cst_40 = arith.constant dense<0.000000e+00> : vector<4xf32>
      %67 = vector.multi_reduction <add>, %66, %cst_40 [1] : vector<4x256xf32> to vector<4xf32>
      %68 = vector.shape_cast %67 : vector<4xf32> to vector<4x1xf32>
      %c0_41 = arith.constant 0 : index
      %c0_42 = arith.constant 0 : index
      %c0_43 = arith.constant 0 : index
      %69 = vector.load %arg6[%c0_41, %c0_42, %c0_43] : memref<1x4x1xf32, #tpu.memory_space<vmem>>, vector<1x4x1xf32>
      %70 = vector.shape_cast %69 : vector<1x4x1xf32> to vector<4x1xf32>
      %71 = vector.shape_cast %68 : vector<4x1xf32> to vector<1x4x1xf32>
      tpu.vector_store %arg6[%c0_41, %c0_42, %c0_43], %71 {strides = array<i32>} : memref<1x4x1xf32, #tpu.memory_space<vmem>>, vector<1x4x1xf32>,
    } else {
    }
    return
  }
  func.func @transform_0(%arg0: i32, %arg1: i32) -> (i32, i32, i32) {
    %c0_i32 = arith.constant 0 : i32
    %c0_i32_0 = arith.constant 0 : i32
    return %arg0, %c0_i32, %arg1 : i32, i32, i32
  }
  func.func @transform_1(%arg0: i32, %arg1: i32) -> (i32, i32, i32) {
    %c0_i32 = arith.constant 0 : i32
    %c0_i32_0 = arith.constant 0 : i32
    return %arg0, %c0_i32, %arg1 : i32, i32, i32
  }
  func.func @transform_2(%arg0: i32, %arg1: i32) -> (i32, i32, i32) {
    %c0_i32 = arith.constant 0 : i32
    %c0_i32_0 = arith.constant 0 : i32
    %c0_i32_1 = arith.constant 0 : i32
    return %arg0, %c0_i32, %c0_i32_0 : i32, i32, i32
  }
  func.func @transform_3(%arg0: i32, %arg1: i32) -> (i32, i32, i32) {
    %c0_i32 = arith.constant 0 : i32
    %c0_i32_0 = arith.constant 0 : i32
    %c0_i32_1 = arith.constant 0 : i32
    return %arg0, %c0_i32, %c0_i32_0 : i32, i32, i32
  }
  func.func @transform_4(%arg0: i32, %arg1: i32) -> (i32, i32, i32) {
    %c0_i32 = arith.constant 0 : i32
    %c0_i32_0 = arith.constant 0 : i32
    %c0_i32_1 = arith.constant 0 : i32
    return %arg0, %c0_i32, %c0_i32_0 : i32, i32, i32
  }
}

</mosaic_0001>

<bundles_post_ra>
// kernel: tpu_custom_call.1
= control target key start
LH: loop header
LB: loop body
LE: loop exit
PB: predicated region body
PF: predicated region fallthrough
CT: control target
= control target key end

     0   :  { %10 = vsyncpa [#allocation6], 0  ;;  %s1088_s0 = inlined_call_operand.hbm [shape: f32[2,4,256], index: 0, kind: input, shape index: {}]   ;;  %s1089_s1 = inlined_call_operand.hbm [shape: s32[2,1,256], index: 1, kind: input, shape index: {}]   ;;  %s1090_s2 = inlined_call_operand.vmem [shape: f32[2,4,1], index: 2, kind: output, shape index: {0}]   ;;  %s1091_s3 = inlined_call_operand.vmem [shape: f32[2,4,1], index: 3, kind: output, shape index: {1}]   ;;  %s1092_s4 = inlined_call_operand.vmem [shape: f32[2,4,1], index: 4, kind: output, shape index: {2}]  }
   0x1   :  { %12 = vsyncpa [#allocation6 + $0x1], 0 }
   0x2   :  { %13 = vsyncpa [#allocation8], 0 }
   0x3   :  { %15 = vsyncpa [#allocation8 + $0x1], 0  ;;  %s862_s15 = smov 0   ;;  %s864_s16 = smov 0  }
   0x4   :  { %s866_s17 = smov 0   ;;  %s868_s18 = smov 0  }
   0x5   :  { %s870_s19 = smov 0   ;;  %s872_s20 = smov 0  }
   0x6 LB: > { %s625_s21 = sadd.s32 4294967295, %s831_s20   ;;  %s33_s22 = sadd.s32 1, %s827_s19  ;;  %s831_s20 = sphi %s872_s20, %s21_s20   ;;  %s827_s19 = sphi %s870_s19, %s1114_s19   ;;  %s823_s18 = sphi %s868_s18, %s1113_s18   ;;  %s819_s17 = sphi %s866_s17, %s1112_s17   ;;  %s815_s16 = sphi %s864_s16, %s1111_s16   ;;  %s811_s15 = sphi %s862_s15, %s1110_s15  }
   0x7   : > { %p35_p0 = scmp.ge.s32.totalorder %s33_s22, 2  ;;  %s42_s23 = sadd.s32 1, %s819_s17 }
   0x8   : > { %p49_p1 = scmp.ne.s32.totalorder %s819_s17, %s815_s16  ;;  %p50_p2 = scmp.eq.s32.totalorder %s831_s20, 0 }
   0x9   : > { %s1116_s22 = smov (%p35_p0, %s33_s22), 0  ;;  %p55_p4 = scmp.ne.s32.totalorder %s815_s16, %s811_s15 }
   0xa   : > { %p898_p3 = por %p50_p2, %p49_p1  ;;  %s37_s25 = ssub.s32 %s827_s19, %s1116_s22 }
   0xb   : > { %p56_p5 = scmp.eq.s32.totalorder %s625_s21, 0  ;;  %p40_p6 = scmp.eq.s32.totalorder %s37_s25, 0 }
   0xc   : > { %p659_p8 = scmp.lt.s32.totalorder %s831_s20, 2  ;;  %s914_s28 = sand.u32 1, %s819_s17  }
   0xd   : > { %p905_p7 = por %p56_p5, %p55_p4  ;;  %s644_s29 = sshll.u32 %s827_s19, 7 }
   0xe   : > { %s911_s27 = scalar_select %p40_p6, %s819_s17, %s42_s23  }
   0xf   : > { %s1095_s26 = scalar_select %p905_p7, 1, 0 }
  0x10   : > { %s629_s30 = sshll.u32 %s914_s28, 3  ;;  %s921_s7 = scalar_lea.hbm %s1088_s0, %s644_s29 }
  0x11   : > { %s189_s8 = scalar_lea.vmem [#allocation5], %s629_s30  ;;  %p925_p9 = pnand %p659_p8, %p898_p3 }
  0x12   : > { %s199_s9 = sshll.u32 %s189_s8, 4  ;;  %s186_s11 = scalar_lea.sflag [#allocation6], %s914_s28  ;;  %s929_s9 = int_to_ptr.vmem [resolvable:$true] %s199_s9 }
  0x13   : > { %s717_s12 = scalar_lea.hbm %s921_s7, 128  ;;  %p719_p13 = pneg %p925_p9 }
  0x14   : > { %p718_p12 = scmp.ne.s32.totalorder %s921_s7, %s717_s12  ;;  %s722_s15 = scalar_lea.hbm %s1088_s0, 256 }
  0x15   : > { %p723_p2 = scmp.lt.u32.totalorder %s921_s7, %s1088_s0  ;;  %p724_p3 = scmp.lt.u32.totalorder %s722_s15, %s717_s12 }
  0x16   : > { %p720_p0 = pnand %p719_p13, %p718_p12  ;;  %p726_p5 = scmp.lt.u32.totalorder %s717_s12, %s921_s7 }
  0x17   : > { %p725_p4 = por %p724_p3, %p723_p2 }
  0x18   : > { %p721_p1 = pneg %p720_p0 }
  0x19   : > { %p727_p6 = por %p726_p5, %p725_p4 }
  0x1b   : > { %p728_p8 = pnand %p727_p6, %p721_p1 }
  0x1d   : > { %731 = shalt.err (!%p728_p8)
}
  0x1e   : > { %s732_s24 = scalar_lea.vmem %s929_s9, 128  ;;  %s833_s25 = smov [#allocation5]  }
  0x1f   : > { %p733_p12 = scmp.ne.s32.totalorder %s929_s9, %s732_s24  ;;  %s737_s29 = sshll.u32 %s833_s25, 4  ;;  %s738_s29 = int_to_ptr.vmem [resolvable:$false] %s737_s29 }
  0x20   : > { %s739_s30 = scalar_lea.vmem %s738_s29, 256  ;;  %p740_p11 = scmp.lt.s32.totalorder %s929_s9, %s738_s29 }
  0x21   : > { %p735_p0 = pnand %p733_p12, %p719_p13  ;;  %p741_p2 = scmp.lt.s32.totalorder %s739_s30, %s732_s24 }
  0x23   : > { %p736_p10 = pneg %p735_p0  ;;  %p742_p3 = por %p741_p2, %p740_p11 }
  0x25   : > { %p743_p4 = pnand %p742_p3, %p736_p10 }
  0x27   : > { %746 = shalt.err (!%p743_p4)
}
  0x28   : > { %655 = dma.hbm_to_vmem [thread:$0]  (!%p925_p9), %s921_s7, 128, %s929_s9, %s186_s11  }
  0x29   : > { %p1097_p1 = scmp.lt.s32.totalorder %s831_s20, 3  ;;  %p1098_p5 = scmp.ge.s32.totalorder %s831_s20, 1 }
  0x2a   : > { %s632_s6 = sshll.u32 %s914_s28, 1  ;;  %s645_s8 = sshll.u32 %s827_s19, 5 }
  0x2b   : > { %p963_p6 = pnand %p1098_p5, %p1097_p1  ;;  %s972_s14 = scalar_lea.hbm %s1089_s1, %s645_s8 }
  0x2c   : > { %s210_s15 = scalar_lea.vmem [#allocation7], %s632_s6  ;;  %s207_s7 = scalar_lea.sflag [#allocation8], %s914_s28 }
  0x2d   : > { %s1099_s5 = scalar_select %p963_p6, 1, 0 }
  0x2e   : > { %s220_s21 = sshll.u32 %s210_s15, 4  ;;  %s747_s9 = scalar_lea.hbm %s972_s14, 32  ;;  %s221_s21 = int_to_ptr.vmem [resolvable:$true] %s220_s21 }
  0x2f   : > { %p748_p10 = scmp.ne.s32.totalorder %s972_s14, %s747_s9  ;;  %s752_s24 = scalar_lea.hbm %s1089_s1, 64 }
  0x30   : > { %p753_p12 = scmp.lt.u32.totalorder %s972_s14, %s1089_s1  ;;  %p754_p0 = scmp.lt.u32.totalorder %s752_s24, %s747_s9 }
  0x31   : > { %p750_p11 = pnand %p748_p10, %p719_p13  ;;  %p756_p3 = scmp.lt.u32.totalorder %s747_s9, %s972_s14 }
  0x32   : > { %p755_p2 = por %p754_p0, %p753_p12 }
  0x33   : > { %p751_p8 = pneg %p750_p11 }
  0x34   : > { %p757_p4 = por %p756_p3, %p755_p2 }
  0x36   : > { %p758_p1 = pnand %p757_p4, %p751_p8 }
  0x38   : > { %761 = shalt.err (!%p758_p1)
}
  0x39   : > { %s762_s28 = scalar_lea.vmem %s221_s21, 32  ;;  %s834_s30 = smov [#allocation7]  }
  0x3a   : > { %p763_p5 = scmp.ne.s32.totalorder %s221_s21, %s762_s28  ;;  %s767_s6 = sshll.u32 %s834_s30, 4  ;;  %s768_s6 = int_to_ptr.vmem [resolvable:$false] %s767_s6 }
  0x3b   : > { %s769_s8 = scalar_lea.vmem %s768_s6, 64  ;;  %p770_p7 = scmp.lt.s32.totalorder %s221_s21, %s768_s6 }
  0x3c   : > { %p765_p10 = pnand %p763_p5, %p719_p13  ;;  %p771_p6 = scmp.lt.s32.totalorder %s769_s8, %s762_s28 }
  0x3e   : > { %p766_p11 = pneg %p765_p10  ;;  %p772_p0 = por %p771_p6, %p770_p7 }
  0x40   : > { %p773_p12 = pnand %p772_p0, %p766_p11 }
  0x42   : > { %776 = shalt.err (!%p773_p12)
}
  0x43   : > { %658 = dma.hbm_to_vmem [thread:$0]  (!%p925_p9), %s972_s14, 32, %s221_s21, %s207_s7  }
  0x44   : > { %p1100_p8 = scmp.ne.s32.totalorder %s1099_s5, 0 }
  0x45   : > { %s231_s12 = sand.u32 (!%p1100_p8), 1, %s815_s16   ;;  %p1101_p13 = scmp.ne.s32.totalorder (!%p1100_p8), %s1095_s26, 0 }
  0x46   : > { %229 = sbr.rel (%p1100_p8) target bundleno = 306 (0x132), region = 28  ;;  %s636_s13 = sshll.u32 (!%p1100_p8), %s231_s12, 3 }
  0x47   : > { %s232_s15 = scalar_lea.sflag (!%p1100_p8), [#allocation6], %s231_s12  ;;  %s235_s9 = scalar_lea.vmem (!%p1100_p8), [#allocation5], %s636_s13 }
  0x4d   : > { %802 = dma.done.wait (%p1101_p13), %s232_s15, 128  }
  0x4e   : > { %804 = vsyncadd (%p1101_p13), %s232_s15, 4294967168  ;;  %s637_s11 = sshll.u32 %s231_s12, 1  ;;  %s241_s23 = scalar_lea.sflag [#allocation8], %s231_s12 }
  0x4f   : > { %s244_s10 = scalar_lea.vmem [#allocation7], %s637_s11 }
  0x50   : > { %806 = dma.done.wait (%p1101_p13), %s241_s23, 32  }
  0x51   : > { %808 = vsyncadd (%p1101_p13), %s241_s23, 4294967264  ;;  %v366_v0 = vlaneseq  ;;  %vm310_vm0 = vcmask 1043456   ;;  %v302_v4 = vld [vmem:[%s235_s9] sm:$0xff]  ;;  %v303_v5 = vld [vmem:[%s244_s10] sm:$0x3]  ;;  %v835_v8 = vmov 0  }
  0x52   : > { %vm304_vm1 = vcmp.ne.s32.totalorder %v303_v5, 4294967295  ;;  %v308_v6 = vcombine.high %v302_v4, %v302_v4  ;;  %v311_v7 = vsel %vm310_vm0, %v302_v4, -inf  ;;  %vm362_vm2 = vcmp.gt.s32.totalorder %v303_v5, 0  ;;  %p283_p7 = scmp.lt.s32.totalorder %s823_s18, 1 }
  0x53   : > { %v367_v1 = vshrl.u32 %v366_v0, 7  ;;  %v305_v9 = vsel %vm304_vm1, 1, %v835_v8  ;;  %v312_v10 = vrot.slane %v311_v7, 4  ;;  %v363_v11 = vsel %vm362_vm2, %v303_v5, 0 }
  0x54   : > { %v836_v12 = vmov 0.0   ;;  %v318_v14 = vsel %vm310_vm0, %v308_v6, -inf  ;;  %vm364_vm3 = vcmp.lt.s32.totalorder %v363_v11, 3  ;;  %s1118_s18 = smov (!%p283_p7, %s823_s18), 1  ;;  %vm439_vm10 = vcmask 3072  }
  0x55   : > { %v370_v2 = vsub.s32 0, %v367_v1  ;;  %v374_v3 = vsub.s32 1, %v367_v1  ;;  %v641_v13 = vsel %vm304_vm1, 1.0, %v836_v12  ;;  %v313_v17 = vmax.f32 %v311_v7, %v312_v10  ;;  %s638_s26 = sshll.u32 %s1118_s18, 2 }
  0x56   : > { %v319_v18 = vrot.slane %v318_v14, 4  ;;  %v365_v19 = vsel %vm364_vm3, %v363_v11, 3  ;;  %s294_s21 = scalar_lea.vmem %s1092_s4, %s638_s26  ;;  %s286_s25 = scalar_lea.vmem %s1090_s2, %s638_s26 }
  0x57   : > { %v381_v15 = vrot.slane %v305_v9, %v370_v2  ;;  %v385_v16 = vrot.slane %v305_v9, %v374_v3  ;;  %v400_v20 = vrot.slane %v641_v13, %v370_v2  ;;  %v371_v21 = vrot.slane %v365_v19, %v370_v2  ;;  %s290_s30 = scalar_lea.vmem %s1091_s3, %s638_s26 }
  0x58   : > { %v375_v22 = vrot.slane %v365_v19, %v374_v3  ;;  %v314_v24 = vrot.slane %v313_v17, 2  ;;  %v320_v25 = vmax.f32 %v318_v14, %v319_v18  ;;  %v404_v27 = vrot.slane %v641_v13, %v374_v3 }
  0x59   : > { %vm1007_vm4 = vcmp.eq.s32.totalorder %v381_v15, 1  ;;  %vm1011_vm5 = vcmp.eq.s32.totalorder %v385_v16, 1  ;;  %vm1015_vm6 = vcmp.eq.s32.totalorder %v367_v1, %v371_v21 }
  0x5a   : > { %vm1019_vm7 = vcmp.eq.s32.totalorder %v367_v1, %v375_v22  ;;  %v315_v30 = vmax.f32 %v313_v17, %v314_v24  ;;  %v321_v31 = vrot.slane %v320_v25, 2  ;;  %vm388_vm8 = vmand %vm1015_vm6, %vm1007_vm4  ;;  %v405_v32 = vcombine.low %v400_v20, %v404_v27 }
  0x5b   : > { %vm389_vm9 = vmand %vm1019_vm7, %vm1011_vm5  ;;  %v408_v33 = vsel %vm388_vm8, 1.0, %v836_v12 }
  0x5c   : > { %v316_v34 = vrot.slane %v315_v30, 1  ;;  %v322_v35 = vmax.f32 %v320_v25, %v321_v31  ;;  %v409_v36 = vsel %vm389_vm9, 1.0, %v836_v12 }
  0x5d   : > { %v423_v37 = vcombine.low %v408_v33, %v409_v36  ;;  %v647_v38 = vcombine.low %v409_v36, %v409_v36 }
  0x5e   : > { %v317_v39 = vmax.f32 %v315_v30, %v316_v34  ;;  %v323_v40 = vrot.slane %v322_v35, 1 }
  0x5f   : > { %v455_v41 = vsel %vm310_vm0, %v423_v37, 0.0  ;;  %v456_v42 = vsel %vm310_vm0, %v647_v38, 0.0 }
  0x60   : > { %v324_v43 = vmax.f32 %v322_v35, %v323_v40  ;;  %v457_v44 = vadd.f32 %v456_v42, %v455_v41 }
  0x62   : > { %v327_v45 = vcombine.low %v317_v39, %v324_v43  ;;  %458 = vadd.xlane.f32.xlu1 %v457_v44 }
  0x64   : > { %v329_v46 = vsub.f32 %v302_v4, %v327_v45 }
  0x66   : > { %v330_v47 = vmul.f32 1.442695, %v329_v46 }
  0x68   : > { %711 = vpow2.f32 %v330_v47 }
  0x72   : > { %v712_v48 = vpop.eup %711 }
  0x73   : > { %v333_v49 = vcombine.high %v712_v48, %v712_v48  ;;  %v335_v50 = vsel %vm310_vm0, %v712_v48, 0.0 }
  0x74   : > { %v336_v51 = vrot.slane %v335_v50, 4 }
  0x75   : > { %v342_v52 = vsel %vm310_vm0, %v333_v49, 0.0 }
  0x76   : > { %v337_v53 = vadd.f32 %v336_v51, %v335_v50  ;;  %v343_v54 = vrot.slane %v342_v52, 4 }
  0x78   : > { %v338_v55 = vrot.slane %v337_v53, 2  ;;  %v344_v56 = vadd.f32 %v343_v54, %v342_v52 }
  0x7a   : > { %v339_v57 = vadd.f32 %v338_v55, %v337_v53  ;;  %v345_v58 = vrot.slane %v344_v56, 2 }
  0x7c   : > { %v340_v59 = vrot.slane %v339_v57, 1  ;;  %v346_v60 = vadd.f32 %v345_v58, %v344_v56 }
  0x7e   : > { %v341_v61 = vadd.f32 %v340_v59, %v339_v57  ;;  %v347_v62 = vrot.slane %v346_v60, 1 }
  0x80   : > { %v348_v63 = vadd.f32 %v347_v62, %v346_v60  ;;  %713 = vrcp.f32 %v341_v61 }
  0x82   : > { %715 = vrcp.f32 %v348_v63 }
  0x8a   : > { %v714_v0 = vpop.eup %713 }
  0x8b   : > { %v351_v1 = vmul.f32 %v714_v0, %v341_v61 }
  0x8c   : > { %v716_v2 = vpop.eup %715 }
  0x8d   : > { %v352_v3 = vmul.f32 %v716_v2, %v348_v63  ;;  %v353_v4 = vsub.f32 2.0, %v351_v1 }
  0x8f   : > { %v354_v5 = vsub.f32 2.0, %v352_v3  ;;  %v355_v6 = vmul.f32 %v714_v0, %v353_v4 }
  0x91   : > { %v356_v7 = vmul.f32 %v716_v2, %v354_v5 }
  0x93   : > { %v359_v8 = vcombine.low %v355_v6, %v356_v7 }
  0x95   : > { %v361_v9 = vmul.f32 %v712_v48, %v359_v8 }
  0x97   : > { %v391_v10 = vcombine.high %v361_v9, %v361_v9  ;;  %v393_v11 = vsel %vm388_vm8, %v361_v9, 0.0  ;;  %v395_v12 = vmul.f32 %v361_v9, %v361_v9 }
  0x99   : > { %v394_v13 = vsel %vm389_vm9, %v391_v10, 0.0  ;;  %v407_v14 = vmul.f32 %v405_v32, %v395_v12 }
  0x9a   : > { %v413_v15 = vcombine.low %v393_v11, %v394_v13  ;;  %v646_v16 = vcombine.low %v394_v13, %v394_v13 }
  0x9b   : > { %v443_v17 = vcombine.high %v407_v14, %v407_v14  ;;  %v445_v20 = vsel %vm310_vm0, %v407_v14, 0.0 }
  0x9c   : > { %v434_v18 = vsel %vm310_vm0, %v413_v15, 0.0  ;;  %v435_v19 = vsel %vm310_vm0, %v646_v16, 0.0 }
  0x9d   : > { %v436_v21 = vadd.f32 %v435_v19, %v434_v18  ;;  %v446_v22 = vsel %vm310_vm0, %v443_v17, 0.0 }
  0x9e   : > { %v447_v23 = vadd.f32 %v446_v22, %v445_v20 }
  0x9f   : > { %437 = vadd.xlane.f32.xlu0 %v436_v21 }
  0xa3   : > { %448 = vadd.xlane.f32.xlu0 %v447_v23 }
  0xef   : > { %v459_v24 = vpop.xlane.xlu1 %458 }
  0xf0   : > { %460 = vst.msk [vmem:[%s294_s21] sm:$0xf] %vm439_vm10, %v459_v24 }
 0x12c   : > { %v438_v25 = vpop.xlane.xlu0 %437 }
 0x12d   : > { %440 = vst.msk [vmem:[%s286_s25] sm:$0xf] %vm439_vm10, %v438_v25 }
 0x130   : > { %v449_v26 = vpop.xlane.xlu0 %448 }
 0x131   : > { %450 = vst.msk [vmem:[%s290_s30] sm:$0xf] %vm439_vm10, %v449_v26 }
 0x132 PF: > { %s21_s20 = sadd.s32 1, %s831_s20   ;;  %s1110_s15 = smov %s815_s16 }
 0x133   : > { %p18_p9 = scmp.ge.s32.totalorder %s21_s20, 4   ;;  %s1111_s16 = smov %s819_s17 }
 0x134   : > { %s1112_s17 = smov %s911_s27  ;;  %s1113_s18 = smov %s827_s19 }
 0x135   : > { %s1114_s19 = smov %s1116_s22  ;;  %20 = sbr.rel (!%p18_p9) target bundleno = 6 (0x6), region = 113 }
 0x13c   :  { %508 = vsyncpa [#allocation6], 1 }
 0x13d   :  { %510 = vsyncpa [#allocation6 + $0x1], 1 }
 0x13e   :  { %511 = vsyncpa [#allocation8], 1 }
 0x13f   :  { %513 = vsyncpa [#allocation8 + $0x1], 1 }

</bundles_post_ra>
